<compile_context>
chip_gen: v7x
topology: tpu7x:2x2x1
jax: 0.10.0
libtpu: 0.0.40
codegen_flags: <defaults>
</compile_context>

<pallas_src>
import functools

import jax
import jax.numpy as jnp
from jax.experimental import pallas as pl
from jax.experimental.pallas import tpu as pltpu

_LANES = 128            # lane width of a vreg
_MAX_BLOCK_ROWS = 2048  # 2048*128*4B = 1 MiB per f32 input block
_NUM_CORES = 2          # leading "parallel" axis (sharded across TCs on v7x)


def _rmspe_partial_kernel(total_rows, blocks_per_core,
                          yt_ref, yp_ref, o_ref, acc_ref):
    """Per-core sequential reduction over row-blocks.

    yt_ref / yp_ref : (block_rows, 128) tiles of the slab (native dtype)
    o_ref           : (1, 1, 128) f32 per-core partial sums (written last step)
    acc_ref         : (block_rows, 128) f32 VMEM accumulator
    """
    c = pl.program_id(0)   # core index ("parallel")
    i = pl.program_id(1)   # row-block within this core ("arbitrary"/reduction)

    @pl.when(i == 0)
    def _():
        acc_ref[...] = jnp.zeros_like(acc_ref)

    yt = yt_ref[...].astype(jnp.float32)
    yp = yp_ref[...].astype(jnp.float32)
    block_rows = yt.shape[0]

    # (y_true - y_pred) / y_pred via the EUP reciprocal slot (exact reciprocal).
    r = (yt - yp) * pl.reciprocal(yp, approx=False)
    r2 = r * r

    # Mask rows outside the real slab (partial edge block / uneven core split);
    # any garbage contribution (even inf/NaN) is replaced by 0 via select.
    global_row0 = (c * blocks_per_core + i) * block_rows
    row_ids = global_row0 + jax.lax.broadcasted_iota(jnp.int32, r2.shape, 0)
    acc_ref[...] += jnp.where(row_ids < total_rows, r2, 0.0)

    @pl.when(i == pl.num_programs(1) - 1)
    def _():
        # One cross-sublane reduce per core (XLU, done once, hidden under DMA).
        part = jnp.sum(acc_ref[...], axis=0, keepdims=True)   # (1, 128)
        o_ref[...] = part[None]                                # (1, 1, 128)


def rmspe_loss(y_true, y_pred):
    """Pallas TPU implementation of RmspeLoss.forward (scalar f32 result)."""
    assert y_true.shape == y_pred.shape
    n = int(y_true.size)

    # Keep the native dtype; upcast to f32 happens inside the kernel.
    yt = jnp.ravel(y_true)
    yp = jnp.ravel(y_pred)

    # Pad only up to the next lane multiple (<= 127 elements) when strictly
    # required; padded y_true = y_pred = 1 contributes ((1-1)/1)^2 = 0.
    lane_pad = (-n) % _LANES
    if lane_pad:
        yt = jnp.concatenate([yt, jnp.ones((lane_pad,), yt.dtype)])
        yp = jnp.concatenate([yp, jnp.ones((lane_pad,), yp.dtype)])

    rows = yt.size // _LANES
    yt2 = yt.reshape(rows, _LANES)   # free reshape (contiguous)
    yp2 = yp.reshape(rows, _LANES)

    if rows >= 8:
        # Multiple of 8 and <= rows -> valid sublane tiling; the partial edge
        # block (rows % block_rows) is handled by the in-kernel row mask.
        block_rows = min(_MAX_BLOCK_ROWS, (rows // 8) * 8)
    else:
        # Tiny input: block equals the full array dim (allowed by (8,128) rule).
        block_rows = rows

    total_blocks = pl.cdiv(rows, block_rows)
    blocks_per_core = pl.cdiv(total_blocks, _NUM_CORES)
    grid = (_NUM_CORES, blocks_per_core)

    def in_map(c, i):
        # Clamp so an uneven core split never indexes past the last block; the
        # in-kernel row mask zeroes any such phantom block's contribution.
        return (jnp.minimum(c * blocks_per_core + i, total_blocks - 1), 0)

    # rows / blocks_per_core are static per trace, so baking them via
    # functools.partial costs no extra recompiles.
    partials = pl.pallas_call(
        functools.partial(_rmspe_partial_kernel, rows, blocks_per_core),
        out_shape=jax.ShapeDtypeStruct((_NUM_CORES, 1, _LANES), jnp.float32),
        grid_spec=pltpu.PrefetchScalarGridSpec(
            num_scalar_prefetch=0,
            grid=grid,
            in_specs=[
                pl.BlockSpec((block_rows, _LANES), in_map),
                pl.BlockSpec((block_rows, _LANES), in_map),
            ],
            out_specs=pl.BlockSpec((1, 1, _LANES), lambda c, i: (c, 0, 0)),
            scratch_shapes=[pltpu.VMEM((block_rows, _LANES), jnp.float32)],
        ),
        compiler_params=pltpu.CompilerParams(
            dimension_semantics=("parallel", "arbitrary"),
        ),
    )(yt2, yp2)

    # Tiny (2, 1, 128) combine + mean + sqrt outside the kernel.
    return jnp.sqrt(jnp.sum(partials, dtype=jnp.float32) / jnp.float32(n))


if __name__ == "__main__":
    key = jax.random.PRNGKey(0)
    k1, k2, k3, k4 = jax.random.split(key, 4)

    loss_fn = jax.jit(rmspe_loss)

    # Small NCHW-like shape consistent with a weather-prediction output tensor
    # (lane-aligned: 2*4*16*16 = 2048 elements).
    shape = (2, 4, 16, 16)
    y_true = jax.random.normal(k1, shape, dtype=jnp.float32)
    # Keep y_pred away from zero (the loss divides by y_pred), mirroring
    # realistic positive predictions.
    y_pred = jax.random.uniform(k2, shape, dtype=jnp.float32,
                                minval=0.5, maxval=2.0)

    loss = jax.block_until_ready(loss_fn(y_true, y_pred))
    ref = jnp.sqrt(jnp.mean(((y_true - y_pred) / y_pred) ** 2))
    assert jnp.allclose(loss, ref, rtol=1e-5, atol=1e-6), (loss, ref)

    # Non-lane-aligned shape exercising the padded / masked tail path.
    shape2 = (3, 5, 7, 11)   # 1155 elements
    y_true2 = jax.random.normal(k3, shape2, dtype=jnp.float32)
    y_pred2 = jax.random.uniform(k4, shape2, dtype=jnp.float32,
                                 minval=0.5, maxval=2.0)

    loss2 = jax.block_until_ready(loss_fn(y_true2, y_pred2))
    ref2 = jnp.sqrt(jnp.mean(((y_true2 - y_pred2) / y_pred2) ** 2))
    assert jnp.allclose(loss2, ref2, rtol=1e-5, atol=1e-6), (loss2, ref2)

    print("KERNEL_OK")
</pallas_src>

<mosaic_0001>
module attributes {stable_mosaic.version = 11 : i64} {
  func.func @_rmspe_partial_kernel(%arg0: i32, %arg1: i32, %arg2: memref<16x128xf32, #tpu.memory_space<vmem>>, %arg3: memref<16x128xf32, #tpu.memory_space<vmem>>, %arg4: memref<1x1x128xf32, #tpu.memory_space<vmem>>, %arg5: memref<16x128xf32, #tpu.memory_space<vmem>>) attributes {dimension_semantics = [#tpu.dimension_semantics<parallel>, #tpu.dimension_semantics<arbitrary>], iteration_bounds = array<i64: 2, 1>, scalar_prefetch = 0 : i64, scratch_operands = 1 : i64, tpu.core_type = #tpu.core_type<tc>, window_params = [{transform_indices = @transform_0, window_bounds = array<i64: 16, 128>}, {transform_indices = @transform_1, window_bounds = array<i64: 16, 128>}, {transform_indices = @transform_2, window_bounds = array<i64: 1, 1, 128>}]} {
    %c0_i32 = arith.constant 0 : i32
    %0 = arith.cmpi eq, %arg1, %c0_i32 : i32
    %1 = arith.extui %0 : i1 to i32
    %c0_i32_0 = arith.constant 0 : i32
    %2 = arith.cmpi ne, %1, %c0_i32_0 : i32
    scf.if %2 {
      %cst_11 = arith.constant 0.000000e+00 : f32
      %25 = vector.broadcast %cst_11 : f32 to vector<16x128xf32>
      %c0_12 = arith.constant 0 : index
      %c0_13 = arith.constant 0 : index
      %26 = vector.load %arg5[%c0_12, %c0_13] : memref<16x128xf32, #tpu.memory_space<vmem>>, vector<16x128xf32>
      tpu.vector_store %arg5[%c0_12, %c0_13], %25 {strides = array<i32>} : memref<16x128xf32, #tpu.memory_space<vmem>>, vector<16x128xf32>,
    } else {
    }
    %c0 = arith.constant 0 : index
    %c0_1 = arith.constant 0 : index
    %3 = vector.load %arg2[%c0, %c0_1] : memref<16x128xf32, #tpu.memory_space<vmem>>, vector<16x128xf32>
    %c0_2 = arith.constant 0 : index
    %c0_3 = arith.constant 0 : index
    %4 = vector.load %arg3[%c0_2, %c0_3] : memref<16x128xf32, #tpu.memory_space<vmem>>, vector<16x128xf32>
    %5 = arith.subf %3, %4 : vector<16x128xf32>
    %6 = tpu.reciprocal %4 : vector<16x128xf32> -> vector<16x128xf32>
    %7 = arith.mulf %5, %6 : vector<16x128xf32>
    %8 = arith.mulf %7, %7 : vector<16x128xf32>
    %c1_i32 = arith.constant 1 : i32
    %9 = arith.muli %arg0, %c1_i32 : i32
    %10 = arith.addi %9, %arg1 : i32
    %c16_i32 = arith.constant 16 : i32
    %11 = arith.muli %10, %c16_i32 : i32
    %12 = tpu.iota {dimensions = array<i32: 0>} : vector<16x128xi32>
    %13 = vector.broadcast %11 : i32 to vector<16x128xi32>
    %14 = arith.addi %13, %12 : vector<16x128xi32>
    %c0_4 = arith.constant 0 : index
    %c0_5 = arith.constant 0 : index
    %15 = vector.load %arg5[%c0_4, %c0_5] : memref<16x128xf32, #tpu.memory_space<vmem>>, vector<16x128xf32>
    %c16_i32_6 = arith.constant 16 : i32
    %16 = vector.broadcast %c16_i32_6 : i32 to vector<16x128xi32>
    %17 = arith.cmpi slt, %14, %16 : vector<16x128xi32>
    %cst = arith.constant 0.000000e+00 : f32
    %18 = vector.broadcast %cst : f32 to vector<16x128xf32>
    %19 = arith.select %17, %8, %18 : vector<16x128xi1>, vector<16x128xf32>
    %20 = arith.addf %15, %19 : vector<16x128xf32>
    %c0_7 = arith.constant 0 : index
    %c0_8 = arith.constant 0 : index
    %21 = vector.load %arg5[%c0_7, %c0_8] : memref<16x128xf32, #tpu.memory_space<vmem>>, vector<16x128xf32>
    tpu.vector_store %arg5[%c0_7, %c0_8], %20 {strides = array<i32>} : memref<16x128xf32, #tpu.memory_space<vmem>>, vector<16x128xf32>,
    %c0_i32_9 = arith.constant 0 : i32
    %22 = arith.cmpi eq, %arg1, %c0_i32_9 : i32
    %23 = arith.extui %22 : i1 to i32
    %c0_i32_10 = arith.constant 0 : i32
    %24 = arith.cmpi ne, %23, %c0_i32_10 : i32
    scf.if %24 {
      %c0_11 = arith.constant 0 : index
      %c0_12 = arith.constant 0 : index
      %25 = vector.load %arg5[%c0_11, %c0_12] : memref<16x128xf32, #tpu.memory_space<vmem>>, vector<16x128xf32>
      %cst_13 = arith.constant dense<0.000000e+00> : vector<128xf32>
      %26 = vector.multi_reduction <add>, %25, %cst_13 [0] : vector<16x128xf32> to vector<128xf32>
      %27 = vector.shape_cast %26 : vector<128xf32> to vector<1x128xf32>
      %28 = vector.shape_cast %27 : vector<1x128xf32> to vector<1x1x128xf32>
      %c0_14 = arith.constant 0 : index
      %c0_15 = arith.constant 0 : index
      %c0_16 = arith.constant 0 : index
      %29 = vector.load %arg4[%c0_14, %c0_15, %c0_16] : memref<1x1x128xf32, #tpu.memory_space<vmem>>, vector<1x1x128xf32>
      tpu.vector_store %arg4[%c0_14, %c0_15, %c0_16], %28 {strides = array<i32>} : memref<1x1x128xf32, #tpu.memory_space<vmem>>, vector<1x1x128xf32>,
    } else {
    }
    return
  }
  func.func @transform_0(%arg0: i32, %arg1: i32) -> (i32, i32) {
    %c1_i32 = arith.constant 1 : i32
    %0 = arith.muli %arg0, %c1_i32 : i32
    %1 = arith.addi %0, %arg1 : i32
    %c0_i32 = arith.constant 0 : i32
    %2 = arith.minsi %1, %c0_i32 : i32
    %c0_i32_0 = arith.constant 0 : i32
    %c0_i32_1 = arith.constant 0 : i32
    return %2, %c0_i32_0 : i32, i32
  }
  func.func @transform_1(%arg0: i32, %arg1: i32) -> (i32, i32) {
    %c1_i32 = arith.constant 1 : i32
    %0 = arith.muli %arg0, %c1_i32 : i32
    %1 = arith.addi %0, %arg1 : i32
    %c0_i32 = arith.constant 0 : i32
    %2 = arith.minsi %1, %c0_i32 : i32
    %c0_i32_0 = arith.constant 0 : i32
    %c0_i32_1 = arith.constant 0 : i32
    return %2, %c0_i32_0 : i32, i32
  }
  func.func @transform_2(%arg0: i32, %arg1: i32) -> (i32, i32, i32) {
    %c0_i32 = arith.constant 0 : i32
    %c0_i32_0 = arith.constant 0 : i32
    %c0_i32_1 = arith.constant 0 : i32
    return %arg0, %c0_i32, %c0_i32_0 : i32, i32, i32
  }
}

</mosaic_0001>

<bundles_post_ra>
// kernel: rmspe_loss.1
= control target key start
LH: loop header
LB: loop body
LE: loop exit
PB: predicated region body
PF: predicated region fallthrough
CT: control target
= control target key end

     0   :  { %s413_s9 = smov 0   ;;  %s415_s10 = smov 0   ;;  %s456_s0 = inlined_call_operand.vmem [shape: f32[16,128], index: 0, kind: input, shape index: {}]   ;;  %s457_s1 = inlined_call_operand.vmem [shape: f32[16,128], index: 1, kind: input, shape index: {}]   ;;  %s458_s2 = inlined_call_operand.vmem [shape: f32[2,1,128], index: 2, kind: output, shape index: {}]  }
   0x1   :  { %s417_s11 = smov 0  }
   0x2 LB: > { %s24_s12 = sadd.s32 1, %s392_s10  ;;  %p338_p0 = scmp.ge.s32.totalorder %s396_s11, 1  ;;  %s396_s11 = sphi %s417_s11, %s12_s11   ;;  %s392_s10 = sphi %s415_s10, %s460_s10   ;;  %s388_s9 = sphi %s413_s9, %s459_s9  }
   0x3   : > { %p26_p1 = scmp.ge.s32.totalorder %s24_s12, 2  ;;  %p160_p2 = scmp.lt.s32.totalorder %s396_s11, 3 }
   0x5   : > { %s462_s12 = smov (%p26_p1, %s24_s12), 0  ;;  %p161_p3 = pnand %p338_p0, %p160_p2 }
   0x6   : > { %p192_p4 = scmp.lt.s32.totalorder (!%p161_p3), %s388_s9, 0  ;;  %v238_v0 = vlaneseq (!%p161_p3)  ;;  %s343_s22 = sshll.u32 (!%p161_p3), %s388_s9, 4 }
   0x7   : > { %164 = sbr.rel (%p161_p3) target bundleno = 55 (0x37), region = 28  ;;  %v241_v7 = vstv (!%p161_p3), %s343_s22  ;;  %p215_p6 = scmp.lt.s32.totalorder (!%p161_p3), %s388_s9, 1 }
   0x8   : > { %v239_v3 = vshrl.u32 (!%p161_p3), %v238_v0, 7 }
   0xa   : > { %v240_v6 = vadd.s32 (!%p161_p3), 8, %v239_v3  ;;  %v242_v10 = vadd.s32 (!%p161_p3), %v241_v7, %v239_v3 }
   0xc   : > { %v243_v11 = vadd.s32 (!%p161_p3), %v241_v7, %v240_v6  ;;  %vm246_vm0 = vcmp.lt.s32.totalorder (!%p161_p3), %v242_v10, 16 }
   0xe   : > { %s193_s13 = scalar_select %p192_p4, %s388_s9, 0  ;;  %vm247_vm1 = vcmp.lt.s32.totalorder %v243_v11, 16 }
   0xf   : > { %s466_s9 = smov (!%p215_p6, %s388_s9), 1 }
  0x10   : > { %s339_s14 = sshll.u32 %s193_s13, 1  ;;  %s217_s25 = scalar_lea.vmem %s458_s2, %s466_s9 }
  0x11   : > { %p195_p5 = scmp.lt.s32.totalorder %s339_s14, 1 }
  0x13   : > { %s464_s14 = smov (!%p195_p5, %s339_s14), 1 }
  0x14   : > { %s340_s15 = sshll.u32 %s464_s14, 3 }
  0x15   : > { %s210_s18 = scalar_lea.vmem %s457_s1, %s340_s15  ;;  %s198_s21 = scalar_lea.vmem %s456_s0, %s340_s15 }
  0x16   : > { %v226_v1 = vld [vmem:[%s210_s18] sm:$0xff]  ;;  %v227_v2 = vld [vmem:[%s210_s18 + $0x8] sm:$0xff] }
  0x17   : > { %370 = vrcp.f32 %v226_v1  ;;  %v224_v4 = vld [vmem:[%s198_s21] sm:$0xff]  ;;  %v225_v5 = vld [vmem:[%s198_s21 + $0x8] sm:$0xff] }
  0x18   : > { %372 = vrcp.f32 %v227_v2  ;;  %v228_v8 = vsub.f32 %v224_v4, %v226_v1  ;;  %v229_v9 = vsub.f32 %v225_v5, %v227_v2 }
  0x21   : > { %v371_v12 = vpop.eup %370 }
  0x22   : > { %v373_v13 = vpop.eup %372  ;;  %v232_v14 = vmul.f32 %v371_v12, %v228_v8 }
  0x23   : > { %v233_v15 = vmul.f32 %v373_v13, %v229_v9 }
  0x24   : > { %v234_v16 = vmul.f32 %v232_v14, %v232_v14 }
  0x25   : > { %v235_v17 = vmul.f32 %v233_v15, %v233_v15 }
  0x26   : > { %v248_v18 = vsel %vm246_vm0, %v234_v16, 0.0 }
  0x27   : > { %v249_v19 = vsel %vm247_vm1, %v235_v17, 0.0 }
  0x28   : > { %v259_v20 = vadd.f32 %v249_v19, %v248_v18 }
  0x2a   : > { %v260_v21 = vrot.slane %v259_v20, 4 }
  0x2c   : > { %v261_v22 = vadd.f32 %v260_v21, %v259_v20 }
  0x2e   : > { %v262_v23 = vrot.slane %v261_v22, 2 }
  0x30   : > { %v263_v24 = vadd.f32 %v262_v23, %v261_v22 }
  0x32   : > { %v264_v25 = vrot.slane %v263_v24, 1 }
  0x34   : > { %v265_v26 = vadd.f32 %v264_v25, %v263_v24 }
  0x36   : > { %266 = vst [vmem:[%s217_s25] sm:$0x1] %v265_v26 }
  0x37 PF: > { %s12_s11 = sadd.s32 1, %s396_s11   ;;  %s459_s9 = smov %s392_s10 }
  0x38   : > { %p9_p7 = scmp.ge.s32.totalorder %s12_s11, 4   ;;  %s460_s10 = smov %s462_s12 }
  0x3a   :  { %11 = sbr.rel (!%p9_p7) target bundleno = 2 (0x2), region = 69 }

</bundles_post_ra>
